<compile_context>
chip_gen: v6e
topology: v6e:2x2x1
jax: 0.10.0
libtpu: 0.0.40
codegen_flags: <defaults>
</compile_context>

<pallas_src>
import math
import jax
import jax.numpy as jnp
from jax.experimental import pallas as pl
from jax.experimental.pallas import tpu as pltpu


def _cdiv(a: int, b: int) -> int:
    return -(-a // b)


def _tpu_config():
    """(vmem_capacity_bytes, two_tensorcores) with conservative fallbacks."""
    vmem = 64 * 1024 * 1024          # conservative default: v7x per-TC VMEM
    two_tc = True                    # conservative default: assume work must split
    try:
        info = pltpu.get_tpu_info()
        cap = getattr(info, "vmem_capacity_bytes", None)
        if cap:
            vmem = int(cap)
    except Exception:
        pass
    try:
        kind = jax.devices()[0].device_kind.lower()
        # v5e / v6e ("lite") parts have a single TensorCore per chip.
        if "lite" in kind or "v5e" in kind or "v6e" in kind:
            two_tc = False
    except Exception:
        pass
    return vmem, two_tc


def make_i2cta_kernel(tb: int, tg: int, gw: int, L: int):
    """Kernel body for a fixed (tb, tg, gw, L) block."""

    def kernel(x_ref, w_ref, o_ref):
        # x_ref: (tb, tg, gw, L) VMEM
        # w_ref: (6, tg, 1)      VMEM  rows = [avg_l, avg_c, avg_r, max_l, max_c, max_r]
        # o_ref: (tb, tg, gw, L) VMEM
        x = x_ref[...]

        # Channel pooling within each group (sublane reduction) for all
        # batches/groups at once.  Accumulate the mean in f32 without
        # materializing a full f32 copy of the block for sub-32-bit inputs.
        avg = jnp.mean(x, axis=2, dtype=jnp.float32)          # (tb, tg, L)
        mx = jnp.max(x, axis=2).astype(jnp.float32)           # (tb, tg, L)

        # Edge masks for the zero-padded k=3 conv, computed once.
        lane = jax.lax.broadcasted_iota(jnp.int32, (tb, tg, L), 2)
        not_first = lane > 0
        not_last = lane < (L - 1)

        w = w_ref[...].astype(jnp.float32)                    # (6, tg, 1)

        acc = jnp.zeros((tb, tg, L), jnp.float32)
        for ci, pooled in enumerate((avg, mx)):                # ci=0: mean, ci=1: max
            # in[l-1] / in[l+1]; pltpu.roll requires non-negative shifts.
            left = jnp.where(not_first, pltpu.roll(pooled, 1, axis=2), 0.0)
            right = jnp.where(not_last, pltpu.roll(pooled, L - 1, axis=2), 0.0)
            acc = (acc
                   + w[3 * ci + 0] * left
                   + w[3 * ci + 1] * pooled
                   + w[3 * ci + 2] * right)

        # Cast the compact (tb, tg, L) map first, then one fused full-tile
        # broadcast store (no per-group partial stores).
        att = jax.nn.sigmoid(acc).astype(o_ref.dtype)          # (tb, tg, L)
        o_ref[...] = jnp.broadcast_to(att[:, :, None, :], (tb, tg, gw, L))

    return kernel


def i2cta_pallas(x: jax.Array, weight: jax.Array, groups: int,
                 *, target_block_bytes: int | None = None) -> jax.Array:
    """x: (B, C, L); weight: (groups, 2, 3) in PyTorch grouped-Conv1d layout.

    Returns the expanded attention map (B, C, L) in x.dtype (the module's
    forward returns the attention map, not x * attention).
    """
    B, C, L = x.shape
    if C % groups != 0:
        raise ValueError(f"channels ({C}) must be divisible by groups ({groups})")
    if weight.shape != (groups, 2, 3):
        raise ValueError(f"weight must have shape ({groups}, 2, 3), got {weight.shape}")
    gw = C // groups

    vmem_bytes, two_tc = _tpu_config()
    big_vmem = vmem_bytes >= (100 << 20)          # v5e/v6e (128 MiB) vs v7x (64 MiB)
    if target_block_bytes is None:
        target_block_bytes = (8 << 20) if big_vmem else (4 << 20)
    base_vmem_cap = (64 << 20) if big_vmem else (40 << 20)

    # ---- tile selection -----------------------------------------------------
    itemsize = x.dtype.itemsize
    per_group_bytes = gw * L * itemsize
    # Largest divisor of `groups` whose slab fits the block budget (>= 1).
    tg = 1
    for d in range(1, groups + 1):
        if groups % d == 0 and d * per_group_bytes <= target_block_bytes:
            tg = d
    # Batches per block; ragged last block handled via cdiv grid (no divisibility).
    tb = 1
    if tg * per_group_bytes <= target_block_bytes:
        tb = max(1, min(B, target_block_bytes // (tg * per_group_bytes)))
    # On dual-TensorCore parts (v7x), make sure there are >= 2 grid steps when
    # there is any splittable work; on single-TC parts keep the blocks big.
    n_g = groups // tg
    if two_tc and _cdiv(B, tb) * n_g < 2:
        if B >= 2:
            tb = (B + 1) // 2
        elif groups >= 2:
            tg = max(d for d in range(1, groups) if groups % d == 0)
            n_g = groups // tg
    n_b = _cdiv(B, tb)
    # TODO(synk): for groups == 1 with a single huge batch (gw*L alone exceeding
    # the block budget), additionally split L with a 1-column halo so blocks
    # stay bounded and both v7x TensorCores get work.

    # ---- data layout --------------------------------------------------------
    # (B, C, L) -> (B, groups, gw, L): free reshape; clean (gw, L) tiles per group.
    x4 = x.reshape(B, groups, gw, L)

    # weight[g, ci, k] -> w6[ci*3 + k, g], then block the group axis so each
    # group-block's weights are addressed by a leading block index (no (8,128)
    # constraint on the tiled dim).
    w6 = jnp.transpose(weight.astype(jnp.float32), (1, 2, 0)).reshape(6, groups)
    w_blk = w6.reshape(6, n_g, tg).transpose(1, 0, 2)[..., None]   # (n_g, 6, tg, 1)

    # ---- VMEM budget --------------------------------------------------------
    block_bytes = tb * tg * gw * L * itemsize
    # in + out double-buffered (~4x) plus intermediates / broadcast store temp (~2x).
    needed = 6 * block_bytes + (2 << 20)
    vmem_limit = int(min(max(base_vmem_cap, needed), vmem_bytes))

    kernel = make_i2cta_kernel(tb, tg, gw, L)

    out4 = pl.pallas_call(
        kernel,
        out_shape=jax.ShapeDtypeStruct((B, groups, gw, L), x.dtype),
        grid=(n_b, n_g),
        in_specs=[
            pl.BlockSpec((tb, tg, gw, L), lambda b, g: (b, g, 0, 0)),
            pl.BlockSpec((None, 6, tg, 1), lambda b, g: (g, 0, 0, 0)),
        ],
        out_specs=pl.BlockSpec((tb, tg, gw, L), lambda b, g: (b, g, 0, 0)),
        compiler_params=pltpu.CompilerParams(
            dimension_semantics=("parallel", "parallel"),
            vmem_limit_bytes=vmem_limit,
        ),
    )(x4, w_blk)

    return out4.reshape(B, C, L)


def i2cta_reference(x: jax.Array, weight: jax.Array, groups: int) -> jax.Array:
    """Pure-JAX reference mirroring the PyTorch forward exactly."""
    B, C, L = x.shape
    gw = C // groups
    x4 = x.reshape(B, groups, gw, L)
    avg = jnp.mean(x4, axis=2)                            # (B, G, L)
    mx = jnp.max(x4, axis=2)                              # (B, G, L)
    pavg = jnp.pad(avg, ((0, 0), (0, 0), (1, 1)))
    pmx = jnp.pad(mx, ((0, 0), (0, 0), (1, 1)))
    acc = jnp.zeros((B, groups, L), jnp.float32)
    for k in range(3):
        acc = acc + weight[None, :, 0, k, None] * pavg[:, :, k:k + L]
        acc = acc + weight[None, :, 1, k, None] * pmx[:, :, k:k + L]
    att = jax.nn.sigmoid(acc)                             # (B, G, L)
    return jnp.broadcast_to(att[:, :, None, :], (B, groups, gw, L)).reshape(B, C, L)


if __name__ == "__main__":
    # Small shapes consistent with the module: channels divisible by groups.
    B, GROUPS, GW, L = 5, 4, 8, 128
    C = GROUPS * GW

    key = jax.random.PRNGKey(0)
    kx, kw = jax.random.split(key)

    x = jax.random.normal(kx, (B, C, L), dtype=jnp.float32)

    # Deterministic Kaiming-normal init of the grouped Conv1d weight (G, 2, 3):
    # fan_in = (in_channels/groups) * kernel = 6, gain = sqrt(2) -> std = sqrt(2/6)
    std = math.sqrt(2.0 / 6.0)
    weight = std * jax.random.normal(kw, (GROUPS, 2, 3), dtype=jnp.float32)

    ref = i2cta_reference(x, weight, GROUPS)

    # 1) Auto (generation-aware) block sizing.
    out = jax.block_until_ready(i2cta_pallas(x, weight, GROUPS))
    assert out.shape == (B, C, L)
    assert jnp.allclose(out, ref, rtol=1e-5, atol=1e-5), "mismatch (auto tiling)"

    # 2) Force group-axis tiling (tg < groups) to exercise the 2-D grid path.
    out_g = jax.block_until_ready(
        i2cta_pallas(x, weight, GROUPS, target_block_bytes=8 * 1024))
    assert jnp.allclose(out_g, ref, rtol=1e-5, atol=1e-5), "mismatch (group tiling)"

    # 3) Force a ragged last batch block (tb=2 over B=5) to exercise cdiv grid.
    out_r = jax.block_until_ready(
        i2cta_pallas(x, weight, GROUPS, target_block_bytes=36 * 1024))
    assert jnp.allclose(out_r, ref, rtol=1e-5, atol=1e-5), "mismatch (ragged batch)"

    print("KERNEL_OK")
</pallas_src>

<mosaic_0001>
module attributes {stable_mosaic.version = 11 : i64} {
  func.func @kernel(%arg0: i32, %arg1: i32, %arg2: memref<3x4x8x128xf32, #tpu.memory_space<vmem>>, %arg3: memref<1x6x4x1xf32, #tpu.memory_space<vmem>>, %arg4: memref<3x4x8x128xf32, #tpu.memory_space<vmem>>) attributes {dimension_semantics = [#tpu.dimension_semantics<parallel>, #tpu.dimension_semantics<parallel>], iteration_bounds = array<i64: 2, 1>, scalar_prefetch = 0 : i64, scratch_operands = 0 : i64, tpu.core_type = #tpu.core_type<tc>, window_params = [{transform_indices = @transform_0, window_bounds = array<i64: 3, 4, 8, 128>}, {transform_indices = @transform_1, window_bounds = array<i64: 1, 6, 4, 1>}, {transform_indices = @transform_2, window_bounds = array<i64: 3, 4, 8, 128>}]} {
    %c0 = arith.constant 0 : index
    %c0_0 = arith.constant 0 : index
    %c0_1 = arith.constant 0 : index
    %c0_2 = arith.constant 0 : index
    %0 = vector.load %arg2[%c0, %c0_0, %c0_1, %c0_2] : memref<3x4x8x128xf32, #tpu.memory_space<vmem>>, vector<3x4x8x128xf32>
    %cst = arith.constant dense<0.000000e+00> : vector<3x4x128xf32>
    %1 = vector.multi_reduction <add>, %0, %cst [2] : vector<3x4x8x128xf32> to vector<3x4x128xf32>
    %cst_3 = arith.constant 8.000000e+00 : f32
    %2 = vector.broadcast %cst_3 : f32 to vector<3x4x128xf32>
    %3 = arith.divf %1, %2 : vector<3x4x128xf32>
    %cst_4 = arith.constant dense<0xFF800000> : vector<3x4x128xf32>
    %4 = vector.multi_reduction <maximumf>, %0, %cst_4 [2] : vector<3x4x8x128xf32> to vector<3x4x128xf32>
    %5 = tpu.iota {dimensions = array<i32: 2>} : vector<3x4x128xi32>
    %c0_i32 = arith.constant 0 : i32
    %6 = vector.broadcast %c0_i32 : i32 to vector<3x4x128xi32>
    %7 = arith.cmpi sgt, %5, %6 : vector<3x4x128xi32>
    %c127_i32 = arith.constant 127 : i32
    %8 = vector.broadcast %c127_i32 : i32 to vector<3x4x128xi32>
    %9 = arith.cmpi slt, %5, %8 : vector<3x4x128xi32>
    %c0_5 = arith.constant 0 : index
    %c0_6 = arith.constant 0 : index
    %c0_7 = arith.constant 0 : index
    %c0_8 = arith.constant 0 : index
    %10 = vector.load %arg3[%c0_5, %c0_6, %c0_7, %c0_8] : memref<1x6x4x1xf32, #tpu.memory_space<vmem>>, vector<1x6x4x1xf32>
    %11 = vector.shape_cast %10 : vector<1x6x4x1xf32> to vector<6x4x1xf32>
    %cst_9 = arith.constant 0.000000e+00 : f32
    %12 = vector.broadcast %cst_9 : f32 to vector<3x4x128xf32>
    %c1_i32 = arith.constant 1 : i32
    %13 = tpu.dynamic_rotate %3 by %c1_i32 dim 2 : vector<3x4x128xf32>, i32 -> vector<3x4x128xf32>
    %cst_10 = arith.constant 0.000000e+00 : f32
    %14 = vector.broadcast %cst_10 : f32 to vector<3x4x128xf32>
    %15 = arith.select %7, %13, %14 : vector<3x4x128xi1>, vector<3x4x128xf32>
    %c127_i32_11 = arith.constant 127 : i32
    %16 = tpu.dynamic_rotate %3 by %c127_i32_11 dim 2 : vector<3x4x128xf32>, i32 -> vector<3x4x128xf32>
    %cst_12 = arith.constant 0.000000e+00 : f32
    %17 = vector.broadcast %cst_12 : f32 to vector<3x4x128xf32>
    %18 = arith.select %9, %16, %17 : vector<3x4x128xi1>, vector<3x4x128xf32>
    %19 = vector.extract_strided_slice %11 {offsets = [0, 0, 0], sizes = [1, 4, 1], strides = [1, 1, 1]} : vector<6x4x1xf32> to vector<1x4x1xf32>
    %20 = vector.shape_cast %19 : vector<1x4x1xf32> to vector<4x1xf32>
    %21 = vector.shape_cast %20 : vector<4x1xf32> to vector<1x4x1xf32>
    %22 = vector.broadcast %21 : vector<1x4x1xf32> to vector<3x4x128xf32>
    %23 = arith.mulf %22, %15 : vector<3x4x128xf32>
    %24 = arith.addf %12, %23 : vector<3x4x128xf32>
    %25 = vector.extract_strided_slice %11 {offsets = [1, 0, 0], sizes = [1, 4, 1], strides = [1, 1, 1]} : vector<6x4x1xf32> to vector<1x4x1xf32>
    %26 = vector.shape_cast %25 : vector<1x4x1xf32> to vector<4x1xf32>
    %27 = vector.shape_cast %26 : vector<4x1xf32> to vector<1x4x1xf32>
    %28 = vector.broadcast %27 : vector<1x4x1xf32> to vector<3x4x128xf32>
    %29 = arith.mulf %28, %3 : vector<3x4x128xf32>
    %30 = arith.addf %24, %29 : vector<3x4x128xf32>
    %31 = vector.extract_strided_slice %11 {offsets = [2, 0, 0], sizes = [1, 4, 1], strides = [1, 1, 1]} : vector<6x4x1xf32> to vector<1x4x1xf32>
    %32 = vector.shape_cast %31 : vector<1x4x1xf32> to vector<4x1xf32>
    %33 = vector.shape_cast %32 : vector<4x1xf32> to vector<1x4x1xf32>
    %34 = vector.broadcast %33 : vector<1x4x1xf32> to vector<3x4x128xf32>
    %35 = arith.mulf %34, %18 : vector<3x4x128xf32>
    %36 = arith.addf %30, %35 : vector<3x4x128xf32>
    %c1_i32_13 = arith.constant 1 : i32
    %37 = tpu.dynamic_rotate %4 by %c1_i32_13 dim 2 : vector<3x4x128xf32>, i32 -> vector<3x4x128xf32>
    %cst_14 = arith.constant 0.000000e+00 : f32
    %38 = vector.broadcast %cst_14 : f32 to vector<3x4x128xf32>
    %39 = arith.select %7, %37, %38 : vector<3x4x128xi1>, vector<3x4x128xf32>
    %c127_i32_15 = arith.constant 127 : i32
    %40 = tpu.dynamic_rotate %4 by %c127_i32_15 dim 2 : vector<3x4x128xf32>, i32 -> vector<3x4x128xf32>
    %cst_16 = arith.constant 0.000000e+00 : f32
    %41 = vector.broadcast %cst_16 : f32 to vector<3x4x128xf32>
    %42 = arith.select %9, %40, %41 : vector<3x4x128xi1>, vector<3x4x128xf32>
    %43 = vector.extract_strided_slice %11 {offsets = [3, 0, 0], sizes = [1, 4, 1], strides = [1, 1, 1]} : vector<6x4x1xf32> to vector<1x4x1xf32>
    %44 = vector.shape_cast %43 : vector<1x4x1xf32> to vector<4x1xf32>
    %45 = vector.shape_cast %44 : vector<4x1xf32> to vector<1x4x1xf32>
    %46 = vector.broadcast %45 : vector<1x4x1xf32> to vector<3x4x128xf32>
    %47 = arith.mulf %46, %39 : vector<3x4x128xf32>
    %48 = arith.addf %36, %47 : vector<3x4x128xf32>
    %49 = vector.extract_strided_slice %11 {offsets = [4, 0, 0], sizes = [1, 4, 1], strides = [1, 1, 1]} : vector<6x4x1xf32> to vector<1x4x1xf32>
    %50 = vector.shape_cast %49 : vector<1x4x1xf32> to vector<4x1xf32>
    %51 = vector.shape_cast %50 : vector<4x1xf32> to vector<1x4x1xf32>
    %52 = vector.broadcast %51 : vector<1x4x1xf32> to vector<3x4x128xf32>
    %53 = arith.mulf %52, %4 : vector<3x4x128xf32>
    %54 = arith.addf %48, %53 : vector<3x4x128xf32>
    %55 = vector.extract_strided_slice %11 {offsets = [5, 0, 0], sizes = [1, 4, 1], strides = [1, 1, 1]} : vector<6x4x1xf32> to vector<1x4x1xf32>
    %56 = vector.shape_cast %55 : vector<1x4x1xf32> to vector<4x1xf32>
    %57 = vector.shape_cast %56 : vector<4x1xf32> to vector<1x4x1xf32>
    %58 = vector.broadcast %57 : vector<1x4x1xf32> to vector<3x4x128xf32>
    %59 = arith.mulf %58, %42 : vector<3x4x128xf32>
    %60 = arith.addf %54, %59 : vector<3x4x128xf32>
    %61 = arith.negf %60 : vector<3x4x128xf32>
    %62 = math.exp %61 : vector<3x4x128xf32>
    %cst_17 = arith.constant 1.000000e+00 : f32
    %63 = vector.broadcast %cst_17 : f32 to vector<3x4x128xf32>
    %64 = arith.addf %63, %62 : vector<3x4x128xf32>
    %65 = arith.divf %63, %64 : vector<3x4x128xf32>
    %66 = vector.shape_cast %65 : vector<3x4x128xf32> to vector<3x4x1x128xf32>
    %67 = vector.shape_cast %66 : vector<3x4x1x128xf32> to vector<3x4x1x128xf32>
    %68 = vector.broadcast %67 : vector<3x4x1x128xf32> to vector<3x4x8x128xf32>
    %c0_18 = arith.constant 0 : index
    %c0_19 = arith.constant 0 : index
    %c0_20 = arith.constant 0 : index
    %c0_21 = arith.constant 0 : index
    %69 = vector.load %arg4[%c0_18, %c0_19, %c0_20, %c0_21] : memref<3x4x8x128xf32, #tpu.memory_space<vmem>>, vector<3x4x8x128xf32>
    tpu.vector_store %arg4[%c0_18, %c0_19, %c0_20, %c0_21], %68 {strides = array<i32>} : memref<3x4x8x128xf32, #tpu.memory_space<vmem>>, vector<3x4x8x128xf32>,
    return
  }
  func.func @transform_0(%arg0: i32, %arg1: i32) -> (i32, i32, i32, i32) {
    %c0_i32 = arith.constant 0 : i32
    %c0_i32_0 = arith.constant 0 : i32
    %c0_i32_1 = arith.constant 0 : i32
    return %arg0, %arg1, %c0_i32, %c0_i32_0 : i32, i32, i32, i32
  }
  func.func @transform_1(%arg0: i32, %arg1: i32) -> (i32, i32, i32, i32) {
    %c0_i32 = arith.constant 0 : i32
    %c0_i32_0 = arith.constant 0 : i32
    %c0_i32_1 = arith.constant 0 : i32
    %c0_i32_2 = arith.constant 0 : i32
    return %arg1, %c0_i32, %c0_i32_0, %c0_i32_1 : i32, i32, i32, i32
  }
  func.func @transform_2(%arg0: i32, %arg1: i32) -> (i32, i32, i32, i32) {
    %c0_i32 = arith.constant 0 : i32
    %c0_i32_0 = arith.constant 0 : i32
    %c0_i32_1 = arith.constant 0 : i32
    return %arg0, %arg1, %c0_i32, %c0_i32_0 : i32, i32, i32, i32
  }
}

</mosaic_0001>

<bundles_post_ra>
// kernel: tpu_custom_call.1
= control target key start
LH: loop header
LB: loop body
LE: loop exit
PB: predicated region body
PF: predicated region fallthrough
CT: control target
= control target key end

     0   :  { %7 = vsyncpa [#allocation3], 0  ;;  %s1490_s0 = inlined_call_operand.hbm [shape: f32[5,4,8,128], index: 0, kind: input, shape index: {}]   ;;  %s1491_s1 = inlined_call_operand.vmem [shape: f32[1,6,4,1], index: 1, kind: input, shape index: {}]   ;;  %s1492_s2 = inlined_call_operand.hbm [shape: f32[5,4,8,128], index: 2, kind: output, shape index: {}]  }
   0x1   :  { %9 = vsyncpa [#allocation3 + $0x1], 0 }
   0x2   :  { %10 = vsyncpa [#allocation4], 0 }
   0x3   :  { %12 = vsyncpa [#allocation4 + $0x1], 0  ;;  %s1098_s9 = smov 0   ;;  %s1100_s10 = smov 0  }
   0x4   :  { %s1102_s11 = smov 0   ;;  %s1104_s12 = smov 0  }
   0x5   :  { %s1106_s13 = smov 0   ;;  %s1108_s14 = smov 0  }
   0x6 LB: > { %s847_s15 = sadd.s32 4294967295, %s1071_s14   ;;  %s848_s16 = sadd.s32 4294967294, %s1071_s14   ;;  %s1071_s14 = sphi %s1108_s14, %s18_s14   ;;  %s1067_s13 = sphi %s1106_s13, %s1502_s13   ;;  %s1063_s12 = sphi %s1104_s12, %s1501_s12   ;;  %s1059_s11 = sphi %s1102_s11, %s1500_s11   ;;  %s1055_s10 = sphi %s1100_s10, %s1499_s10   ;;  %s1051_s9 = sphi %s1098_s9, %s1498_s9  }
   0x7   : > { %s30_s17 = sadd.s32 1, %s1067_s13  ;;  %s39_s18 = sadd.s32 1, %s1059_s11 }
   0x8   : > { %p32_p0 = scmp.ge.s32.totalorder %s30_s17, 2  ;;  %p46_p1 = scmp.ne.s32.totalorder %s1059_s11, %s1055_s10 }
   0x9   : > { %p47_p2 = scmp.eq.s32.totalorder %s1071_s14, 0  ;;  %p52_p3 = scmp.ne.s32.totalorder %s1055_s10, %s1051_s9 }
   0xa   : > { %s1504_s17 = smov (%p32_p0, %s30_s17), 0  ;;  %p53_p5 = scmp.eq.s32.totalorder %s847_s15, 0 }
   0xb   : > { %p48_p4 = por %p47_p2, %p46_p1  ;;  %s34_s19 = ssub.s32 %s1067_s13, %s1504_s17 }
   0xc   : > { %p104_p6 = scmp.eq.s32.totalorder %s847_s15, 1  ;;  %p37_p7 = scmp.eq.s32.totalorder %s34_s19, 0 }
   0xd   : > { %p1141_p8 = por %p53_p5, %p52_p3  ;;  %p110_p10 = scmp.eq.s32.totalorder %s848_s16, 1 }
   0xe   : > { %p1145_p9 = por %p104_p6, %p46_p1  ;;  %p1493_p12 = scmp.ge.s32.totalorder %s1071_s14, 2 }
   0xf   : > { %s1150_s22 = scalar_select %p37_p7, %s1059_s11, %s39_s18  }
  0x10   : > { %p1152_p11 = por %p110_p10, %p52_p3  ;;  %134 = sbr.rel (%p1493_p12) target bundleno = 55 (0x37), region = 20 }
  0x15   : > { %137 = sbr.rel (!%p48_p4) target bundleno = 55 (0x37), region = 24  ;;  %s138_s24 = sand.u32 (%p48_p4), 1, %s1059_s11  }
  0x16   : > { %s143_s25 = smul.u32 (%p48_p4), 3, %s1067_s13  ;;  %s1164_s30 = scalar_lea.sflag (%p48_p4), [#allocation3], %s138_s24 }
  0x17   : > { %s886_s26 = smul.u32 (%p48_p4), 96, %s138_s24 }
  0x18   : > { %s145_s27 = ssub.s32 (%p48_p4), 5, %s143_s25 }
  0x19   : > { %p146_p13 = scmp.lt.s32.totalorder (%p48_p4), %s145_s27, 3  ;;  %s142_s3 = scalar_lea.vmem (%p48_p4), [#allocation2], %s886_s26 }
  0x1b   : > { %s1506_s27 = smov (!%p146_p13, %s145_s27), 3 }
  0x1c   : > { %s1161_s28 = sshll.u32 %s1506_s27, 9 }
  0x1d   : > { %s151_s29 = ssub.s32 1536, %s1161_s28 }
  0x1e   : > { %152 = vsyncadd %s1164_s30, %s151_s29  ;;  %p854_p0 = scmp.ne.s32.totalorder %s1161_s28, 0  ;;  %s884_s4 = smul.u32 1536, %s1067_s13 }
  0x1f   : > { %s160_s5 = sshll.u32 %s142_s3, 4  ;;  %s969_s19 = scalar_lea.hbm %s1490_s0, 2560  ;;  %s1174_s5 = int_to_ptr.vmem [resolvable:$true] %s160_s5 }
  0x20   : > { %s1172_s8 = scalar_lea.hbm %s1490_s0, %s884_s4 }
  0x21   : > { %s965_s15 = scalar_lea.hbm %s1172_s8, %s1161_s28 }
  0x22   : > { %p966_p1 = scmp.ne.s32.totalorder %s1172_s8, %s965_s15  ;;  %p971_p4 = scmp.lt.s32.totalorder %s969_s19, %s965_s15 }
  0x24   : > { %p967_p2 = pnand %p966_p1, %p854_p0 }
  0x26   : > { %p968_p3 = pneg %p967_p2 }
  0x28   : > { %p973_p5 = pnand %p971_p4, %p968_p3 }
  0x2a   : > { %976 = shalt.err (!%p973_p5)
}
  0x2b   : > { %s977_s24 = scalar_lea.vmem %s1174_s5, %s1161_s28  ;;  %s1073_s25 = smov [#allocation2]  }
  0x2c   : > { %p978_p6 = scmp.ne.s32.totalorder %s1174_s5, %s977_s24  ;;  %s981_s26 = sshll.u32 %s1073_s25, 4  ;;  %s982_s26 = int_to_ptr.vmem [resolvable:$false] %s981_s26 }
  0x2d   : > { %s983_s27 = scalar_lea.vmem %s982_s26, 3072  ;;  %p984_p13 = scmp.lt.s32.totalorder %s1174_s5, %s982_s26 }
  0x2e   : > { %p979_p7 = pnand %p978_p6, %p854_p0  ;;  %p985_p1 = scmp.lt.s32.totalorder %s983_s27, %s977_s24 }
  0x30   : > { %p980_p10 = pneg %p979_p7  ;;  %p986_p2 = por %p985_p1, %p984_p13 }
  0x32   : > { %p987_p12 = pnand %p986_p2, %p980_p10 }
  0x34   : > { %990 = shalt.err (!%p987_p12)
}
  0x35   : > { %s1074_s29 = smov 128   ;;  %s1075_s3 = smov 8  }
  0x36   : > { %166 = dma.hbm_to_vmem [thread:$0]  (%p854_p0), %s1172_s8, %s1161_s28, %s1174_s5, %s1164_s30, %s1074_s29, %s1074_s29, %s1075_s3  }
  0x37 PF: > { %p860_p3 = scmp.ge.s32.totalorder %s1071_s14, 1  ;;  %p168_p4 = scmp.lt.s32.totalorder %s1071_s14, 3 }
  0x39   : > { %p169_p5 = pnand %p860_p3, %p168_p4 }
  0x3a   : > { %s1199_s4 = sand.u32 (!%p169_p5), 1, %s1055_s10  }
  0x3b   : > { %172 = sbr.rel (%p169_p5) target bundleno = 319 (0x13f), region = 28  ;;  %s175_s7 = scalar_lea.sflag (!%p169_p5), [#allocation3], %s1199_s4 }
  0x3c   : > { %s887_s6 = smul.u32 (!%p169_p5), 96, %s1199_s4 }
  0x3e   : > { %s1205_s15 = scalar_lea.vmem (!%p169_p5), [#allocation2], %s887_s6 }
  0x40   : > { %1042 = dma.done.wait (%p1141_p8), %s175_s7, 1536  }
  0x41   : > { %1044 = vsyncadd (%p1141_p8), %s175_s7, 4294965760  ;;  %v1076_v0 = vmov 0   ;;  %v396_v1 = vld [vmem:[%s1491_s1] sm:$0xf]  ;;  %v398_v2 = vld [vmem:[%s1491_s1 + $0x8] sm:$0xf] }
  0x42   : > { %951 = vset.pattern.permute.xlu0 %v1076_v0  ;;  %952 = vset.pattern.permute.xlu1 %v1076_v0  ;;  %v397_v3 = vld [vmem:[%s1491_s1 + $0x4] sm:$0xf]  ;;  %v1224_v5 = vld [vmem:[%s1205_s15 + $0x8] sm:$0xff]  ;;  %v1227_v6 = vld [vmem:[%s1205_s15 + $0x10] sm:$0xff]  ;;  %vm414_vm0 = vcmask 1041409   ;;  %vm416_vm1 = vcmask 1042434  }
  0x43   : > { %449 = vperm.xlu0 %951, %v396_v1   ;;  %471 = vperm.xlu1 %952, %v398_v2   ;;  %v1221_v4 = vld [vmem:[%s1205_s15] sm:$0xff]  ;;  %v1230_v7 = vld [vmem:[%s1205_s15 + $0x18] sm:$0xff]  ;;  %v241_v9 = vrot.slane %v1224_v5, 4  ;;  %v247_v10 = vrot.slane %v1227_v6, 4  ;;  %v1240_v13 = vld [vmem:[%s1205_s15 + $0x28] sm:$0xff]  ;;  %vm418_vm2 = vcmask 1043459  }
  0x44   : > { %v235_v8 = vrot.slane %v1221_v4, 4  ;;  %v253_v11 = vrot.slane %v1230_v7, 4  ;;  %v1237_v12 = vld [vmem:[%s1205_s15 + $0x20] sm:$0xff]  ;;  %v1243_v14 = vld [vmem:[%s1205_s15 + $0x30] sm:$0xff]  ;;  %v1249_v16 = vld [vmem:[%s1205_s15 + $0x38] sm:$0xff]  ;;  %v265_v18 = vrot.slane %v1240_v13, 4 }
  0x45   : > { %v259_v17 = vrot.slane %v1237_v12, 4  ;;  %v271_v19 = vrot.slane %v1243_v14, 4  ;;  %v327_v20 = vmax.f32 %v1224_v5, %v241_v9  ;;  %v333_v21 = vmax.f32 %v1227_v6, %v247_v10  ;;  %v399_v24 = vld [vmem:[%s1491_s1 + $0xc] sm:$0xf]  ;;  %v400_v41 = vld [vmem:[%s1491_s1 + $0x10] sm:$0xf] }
  0x46   : > { %v321_v15 = vmax.f32 %v1221_v4, %v235_v8  ;;  %v339_v22 = vmax.f32 %v1230_v7, %v253_v11  ;;  %v277_v23 = vrot.slane %v1249_v16, 4  ;;  %v351_v27 = vmax.f32 %v1240_v13, %v265_v18  ;;  %v1283_v50 = vld [vmem:[%s1205_s15 + $0x40] sm:$0xff]  ;;  %v1286_v55 = vld [vmem:[%s1205_s15 + $0x48] sm:$0xff]  ;;  %v1289_v56 = vld [vmem:[%s1205_s15 + $0x50] sm:$0xff]  ;;  %s1077_s26 = smov 1   ;;  %s1078_s27 = smov 127  }
  0x47   : > { %460 = vperm.xlu0 %951, %v397_v3   ;;  %v345_v26 = vmax.f32 %v1237_v12, %v259_v17  ;;  %v357_v28 = vmax.f32 %v1243_v14, %v271_v19  ;;  %v328_v29 = vrot.slane %v327_v20, 2  ;;  %v334_v30 = vrot.slane %v333_v21, 2  ;;  %v1292_v61 = vld [vmem:[%s1205_s15 + $0x58] sm:$0xff]  ;;  %s1409_s7 = scalar_lea.vmem [#allocation5], %s887_s6  ;;  %s721_s6 = scalar_lea.sflag [#allocation4], %s1199_s4 }
  0x48   : > { %v322_v25 = vrot.slane %v321_v15, 2  ;;  %v340_v31 = vrot.slane %v339_v22, 2  ;;  %v363_v32 = vmax.f32 %v1249_v16, %v277_v23  ;;  %v352_v35 = vrot.slane %v351_v27, 2  ;;  %s728_s15 = smul.u32 (%p1145_p9), 3, %s1063_s12 }
  0x49   : > { %v346_v34 = vrot.slane %v345_v26, 2  ;;  %v358_v36 = vrot.slane %v357_v28, 2  ;;  %v329_v37 = vmax.f32 %v327_v20, %v328_v29  ;;  %v335_v38 = vmax.f32 %v333_v21, %v334_v30 }
  0x4a   : > { %v323_v33 = vmax.f32 %v321_v15, %v322_v25  ;;  %v341_v39 = vmax.f32 %v339_v22, %v340_v31  ;;  %v364_v40 = vrot.slane %v363_v32, 2  ;;  %v353_v44 = vmax.f32 %v351_v27, %v352_v35  ;;  %s730_s28 = ssub.s32 (%p1145_p9), 5, %s728_s15 }
  0x4b   : > { %524 = vperm.xlu0 %951, %v399_v24   ;;  %v347_v43 = vmax.f32 %v345_v26, %v346_v34  ;;  %v359_v45 = vmax.f32 %v357_v28, %v358_v36  ;;  %v330_v46 = vrot.slane %v329_v37, 1  ;;  %v336_v47 = vrot.slane %v335_v38, 1  ;;  %p731_p8 = scmp.lt.s32.totalorder (%p1145_p9), %s730_s28, 3 }
  0x4c   : > { %v324_v42 = vrot.slane %v323_v33, 1  ;;  %v342_v48 = vrot.slane %v341_v39, 1  ;;  %v365_v49 = vmax.f32 %v363_v32, %v364_v40  ;;  %v354_v53 = vrot.slane %v353_v44, 1 }
  0x4d   : > { %v348_v52 = vrot.slane %v347_v43, 1  ;;  %v360_v54 = vrot.slane %v359_v45, 1  ;;  %v331_v57 = vmax.f32 %v329_v37, %v330_v46  ;;  %v337_v58 = vmax.f32 %v335_v38, %v336_v47 }
  0x4e   : > { %v325_v51 = vmax.f32 %v323_v33, %v324_v42  ;;  %v343_v59 = vmax.f32 %v341_v39, %v342_v48  ;;  %v366_v60 = vrot.slane %v365_v49, 1  ;;  %v355_v63 = vmax.f32 %v353_v44, %v354_v53 }
  0x4f   : > { %535 = vperm.xlu0 %951, %v400_v41   ;;  %v349_v62 = vmax.f32 %v347_v43, %v348_v52  ;;  %v361_v0 = vmax.f32 %v359_v45, %v360_v54  ;;  %v283_v1 = vrot.slane %v1283_v50, 4  ;;  %v289_v15 = vrot.slane %v1286_v55, 4 }
  0x50   : > { %v492_v2 = vsel %vm414_vm0, %v331_v57, %v325_v51  ;;  %v367_v3 = vmax.f32 %v365_v49, %v366_v60  ;;  %v295_v20 = vrot.slane %v1289_v56, 4  ;;  %v301_v24 = vrot.slane %v1292_v61, 4 }
  0x51   : > { %v493_v21 = vsel %vm416_vm1, %v337_v58, %v492_v2  ;;  %v495_v22 = vsel %vm414_vm0, %v355_v63, %v349_v62  ;;  %v369_v25 = vmax.f32 %v1283_v50, %v283_v1  ;;  %v375_v28 = vmax.f32 %v1286_v55, %v289_v15 }
  0x52   : > { %v1305_v26 = vsel %vm418_vm2, %v343_v59, %v493_v21  ;;  %v496_v27 = vsel %vm416_vm1, %v361_v0, %v495_v22  ;;  %v381_v29 = vmax.f32 %v1289_v56, %v295_v20  ;;  %v387_v32 = vmax.f32 %v1292_v61, %v301_v24 }
  0x53   : > { %504 = vrot.lane.b32.xlu1 %v1305_v26, %s1077_s26  ;;  %v1317_v30 = vsel %vm418_vm2, %v367_v3, %v496_v27  ;;  %v370_v31 = vrot.slane %v369_v25, 2  ;;  %v260_v33 = vadd.f32 %v259_v17, %v1237_v12  ;;  %v376_v34 = vrot.slane %v375_v28, 2 }
  0x54   : > { %506 = vrot.lane.b32.xlu0 %v1317_v30, %s1077_s26  ;;  %v382_v35 = vrot.slane %v381_v29, 2  ;;  %v266_v36 = vadd.f32 %v265_v18, %v1240_v13  ;;  %v272_v37 = vadd.f32 %v271_v19, %v1243_v14  ;;  %v388_v39 = vrot.slane %v387_v32, 2 }
  0x55   : > { %v371_v38 = vmax.f32 %v369_v25, %v370_v31  ;;  %v261_v40 = vrot.slane %v260_v33, 2  ;;  %v278_v12 = vadd.f32 %v277_v23, %v1249_v16  ;;  %v377_v17 = vmax.f32 %v375_v28, %v376_v34 }
  0x56   : > { %v383_v41 = vmax.f32 %v381_v29, %v382_v35  ;;  %v267_v42 = vrot.slane %v266_v36, 2  ;;  %v273_v43 = vrot.slane %v272_v37, 2  ;;  %v389_v45 = vmax.f32 %v387_v32, %v388_v39 }
  0x57   : > { %v372_v44 = vrot.slane %v371_v38, 1  ;;  %v262_v46 = vadd.f32 %v261_v40, %v260_v33  ;;  %v279_v47 = vrot.slane %v278_v12, 2  ;;  %v378_v13 = vrot.slane %v377_v17, 1 }
  0x58   : > { %v384_v18 = vrot.slane %v383_v41, 1  ;;  %v268_v48 = vadd.f32 %v267_v42, %v266_v36  ;;  %v274_v49 = vadd.f32 %v273_v43, %v272_v37  ;;  %v390_v19 = vrot.slane %v389_v45, 1 }
  0x59   : > { %v373_v14 = vmax.f32 %v371_v38, %v372_v44  ;;  %v263_v51 = vrot.slane %v262_v46, 1  ;;  %v280_v52 = vadd.f32 %v279_v47, %v278_v12  ;;  %v379_v53 = vmax.f32 %v377_v17, %v378_v13 }
  0x5a   : > { %v385_v54 = vmax.f32 %v383_v41, %v384_v18  ;;  %v269_v57 = vrot.slane %v268_v48, 1  ;;  %v275_v16 = vrot.slane %v274_v49, 1  ;;  %v391_v23 = vmax.f32 %v389_v45, %v390_v19 }
  0x5b   : > { %v264_v58 = vadd.f32 %v263_v51, %v262_v46  ;;  %v281_v59 = vrot.slane %v280_v52, 1  ;;  %v236_v60 = vadd.f32 %v235_v8, %v1221_v4  ;;  %v498_v62 = vsel %vm414_vm0, %v379_v53, %v373_v14 }
  0x5c   : > { %v270_v63 = vadd.f32 %v269_v57, %v268_v48  ;;  %v276_v0 = vadd.f32 %v275_v16, %v274_v49  ;;  %v242_v2 = vadd.f32 %v241_v9, %v1224_v5  ;;  %v499_v3 = vsel %vm416_vm1, %v385_v54, %v498_v62 }
  0x5d   : > { %v282_v21 = vadd.f32 %v281_v59, %v280_v52  ;;  %v312_v22 = vmul.f32 0.125, %v264_v58  ;;  %v237_v25 = vrot.slane %v236_v60, 2  ;;  %v1345_v27 = vsel %vm418_vm2, %v391_v23, %v499_v3 }
  0x5e   : > { %v313_v28 = vmul.f32 0.125, %v270_v63  ;;  %v314_v29 = vmul.f32 0.125, %v276_v0  ;;  %v243_v31 = vrot.slane %v242_v2, 2  ;;  %508 = vrot.lane.b32.xlu1 %v1345_v27, %s1077_s26  ;;  %v248_v5 = vadd.f32 %v247_v10, %v1227_v6 }
  0x5f   : > { %v315_v4 = vmul.f32 0.125, %v282_v21  ;;  %v238_v8 = vadd.f32 %v237_v25, %v236_v60  ;;  %v254_v9 = vadd.f32 %v253_v11, %v1230_v7  ;;  %v284_v34 = vadd.f32 %v283_v1, %v1283_v50 }
  0x60   : > { %v420_v32 = vsel %vm414_vm0, %v313_v28, %v312_v22  ;;  %v244_v33 = vadd.f32 %v243_v31, %v242_v2  ;;  %v290_v35 = vadd.f32 %v289_v15, %v1286_v55  ;;  %v249_v38 = vrot.slane %v248_v5, 2 }
  0x61   : > { %v421_v36 = vsel %vm416_vm1, %v314_v29, %v420_v32  ;;  %v239_v37 = vrot.slane %v238_v8, 1  ;;  %v255_v6 = vrot.slane %v254_v9, 2  ;;  %v285_v11 = vrot.slane %v284_v34, 2 }
  0x62   : > { %v1364_v10 = vsel %vm418_vm2, %v315_v4, %v421_v36  ;;  %v245_v7 = vrot.slane %v244_v33, 1  ;;  %v291_v39 = vrot.slane %v290_v35, 2  ;;  %v250_v50 = vadd.f32 %v249_v38, %v248_v5 }
  0x63   : > { %431 = vrot.lane.b32.xlu0 %v1364_v10, %s1077_s26  ;;  %v240_v40 = vadd.f32 %v239_v37, %v238_v8  ;;  %v256_v1 = vadd.f32 %v255_v6, %v254_v9  ;;  %v296_v55 = vadd.f32 %v295_v20, %v1289_v56  ;;  %v286_v12 = vadd.f32 %v285_v11, %v284_v34 }
  0x64   : > { %v246_v15 = vadd.f32 %v245_v7, %v244_v33  ;;  %v292_v17 = vadd.f32 %v291_v39, %v290_v35  ;;  %v302_v41 = vadd.f32 %v301_v24, %v1292_v61  ;;  %v251_v42 = vrot.slane %v250_v50, 1  ;;  %v401_v61 = vld [vmem:[%s1491_s1 + $0x14] sm:$0xf] }
  0x65   : > { %v257_v43 = vrot.slane %v256_v1, 1  ;;  %v308_v44 = vmul.f32 0.125, %v240_v40  ;;  %v297_v45 = vrot.slane %v296_v55, 2  ;;  %v287_v47 = vrot.slane %v286_v12, 1 }
  0x66   : > { %v309_v46 = vmul.f32 0.125, %v246_v15  ;;  %v293_v13 = vrot.slane %v292_v17, 1  ;;  %v303_v18 = vrot.slane %v302_v41, 2  ;;  %v252_v48 = vadd.f32 %v251_v42, %v250_v50 }
  0x67   : > { %v258_v49 = vadd.f32 %v257_v43, %v256_v1  ;;  %440 = vrot.lane.b32.xlu0 %v1364_v10, %s1078_s27  ;;  %v298_v56 = vadd.f32 %v297_v45, %v296_v55  ;;  %v288_v14 = vadd.f32 %v287_v47, %v286_v12  ;;  %v392_v4 = vlaneseq }
  0x68   : > { %v415_v20 = vsel %vm414_vm0, %v309_v46, %v308_v44  ;;  %v294_v19 = vadd.f32 %v293_v13, %v292_v17  ;;  %v304_v51 = vadd.f32 %v303_v18, %v302_v41  ;;  %v310_v24 = vmul.f32 0.125, %v252_v48 }
  0x69   : > { %v311_v52 = vmul.f32 0.125, %v258_v49  ;;  %v299_v53 = vrot.slane %v298_v56, 1  ;;  %v316_v57 = vmul.f32 0.125, %v288_v14  ;;  %v393_v9 = vand.u32 127, %v392_v4 }
  0x6a   : > { %v305_v54 = vrot.slane %v304_v51, 1  ;;  %v317_v16 = vmul.f32 0.125, %v294_v19  ;;  %v417_v23 = vsel %vm416_vm1, %v310_v24, %v415_v20 }
  0x6b   : > { %v300_v58 = vadd.f32 %v299_v53, %v298_v56  ;;  %546 = vperm.xlu0 %951, %v401_v61   ;;  %v419_v59 = vsel %vm418_vm2, %v311_v52, %v417_v23  ;;  %vm394_vm3 = vcmp.gt.s32.totalorder %v393_v9, 0  ;;  %vm395_vm4 = vcmp.lt.s32.totalorder %v393_v9, 127 }
  0x6c   : > { %v306_v60 = vadd.f32 %v305_v54, %v304_v51  ;;  %v423_v62 = vsel %vm414_vm0, %v317_v16, %v316_v57  ;;  %429 = vrot.lane.b32.xlu1 %v419_v59, %s1077_s26  ;;  %v580_v9 = vshrl.u32 %v392_v4, 7 }
  0x6d   : > { %v318_v63 = vmul.f32 0.125, %v300_v58 }
  0x6e   : > { %v319_v0 = vmul.f32 0.125, %v306_v60 }
  0x6f   : > { %v424_v2 = vsel %vm416_vm1, %v318_v63, %v423_v62  ;;  %515 = vrot.lane.b32.xlu0 %v1317_v30, %s1078_s27 }
  0x70   : > { %v425_v3 = vsel %vm418_vm2, %v319_v0, %v424_v2 }
  0x71   : > { %433 = vrot.lane.b32.xlu1 %v425_v3, %s1077_s26 }
  0x75   : > { %438 = vrot.lane.b32.xlu1 %v419_v59, %s1078_s27 }
  0x79   : > { %442 = vrot.lane.b32.xlu1 %v425_v3, %s1078_s27 }
  0x7d   : > { %513 = vrot.lane.b32.xlu1 %v1305_v26, %s1078_s27 }
  0x81   : > { %517 = vrot.lane.b32.xlu1 %v1345_v27, %s1078_s27 }
  0xbe   : > { %v450_v21 = vpop.permute.xlu0 %449  ;;  %v472_v29 = vpop.permute.xlu1 %471 }
  0xc2   : > { %v461_v22 = vpop.permute.xlu0 %460 }
  0xc3   : > { %v464_v38 = vmul.f32 %v461_v22, %v1364_v10  ;;  %v463_v17 = vmul.f32 %v461_v22, %v419_v59  ;;  %v465_v18 = vmul.f32 %v461_v22, %v425_v3 }
  0xc5   : > { %v505_v8 = vpop.permute.xlu1 %504 }
  0xc6   : > { %v525_v25 = vpop.permute.xlu0 %524  ;;  %v510_v42 = vsel %vm394_vm3, %v505_v8, 0.0 }
  0xc7   : > { %v527_v48 = vmul.f32 %v525_v25, %v510_v42 }
  0xca   : > { %v536_v28 = vpop.permute.xlu0 %535 }
  0xcb   : > { %v539_v47 = vmul.f32 %v536_v28, %v1317_v30  ;;  %v538_v30 = vmul.f32 %v536_v28, %v1305_v26  ;;  %v540_v0 = vmul.f32 %v536_v28, %v1345_v27 }
  0xce   : > { %v507_v31 = vpop.permute.xlu0 %506 }
  0xcf   : > { %v511_v39 = vsel %vm394_vm3, %v507_v31, 0.0 }
  0xd0   : > { %v509_v32 = vpop.permute.xlu1 %508  ;;  %v528_v55 = vmul.f32 %v525_v25, %v511_v39 }
  0xd1   : > { %v512_v14 = vsel %vm394_vm3, %v509_v32, 0.0 }
  0xd2   : > { %v529_v57 = vmul.f32 %v525_v25, %v512_v14 }
  0xd5   : > { %v432_v5 = vpop.permute.xlu0 %431 }
  0xd6   : > { %v436_v34 = vsel %vm394_vm3, %v432_v5, 0.0 }
  0xd7   : > { %v453_v36 = vmul.f32 %v450_v21, %v436_v34  ;;  %v1079_v34 = vmov 1966171168  }
  0xd9   : > { %v441_v33 = vpop.permute.xlu0 %440  ;;  %v467_v11 = vadd.f32 %v464_v38, %v453_v36 }
  0xda   : > { %v445_v35 = vsel %vm395_vm4, %v441_v33, 0.0 }
  0xdb   : > { %v475_v6 = vmul.f32 %v472_v29, %v445_v35  ;;  %v577_v35 = vunpack.c.l.s4 %v1079_v34 }
  0xdd   : > { %v478_v50 = vadd.f32 %v475_v6, %v467_v11  ;;  %v578_v36 = vunpack.c.0.s8 %v577_v35 }
  0xde   : > { %v430_v37 = vpop.permute.xlu1 %429 }
  0xdf   : > { %v435_v7 = vsel %vm394_vm3, %v430_v37, 0.0  ;;  %v531_v10 = vadd.f32 %v528_v55, %v478_v50  ;;  %v581_v37 = vsub.s32 %v578_v36, %v580_v9 }
  0xe0   : > { %v452_v1 = vmul.f32 %v450_v21, %v435_v7  ;;  %v650_v7 = vsub.s32 0, %v580_v9 }
  0xe1   : > { %v542_v51 = vadd.f32 %v539_v47, %v531_v10 }
  0xe2   : > { %v466_v44 = vadd.f32 %v463_v17, %v452_v1 }
  0xe3   : > { %v434_v40 = vpop.permute.xlu1 %433 }
  0xe4   : > { %v437_v15 = vsel %vm394_vm3, %v434_v40, 0.0 }
  0xe5   : > { %v454_v45 = vmul.f32 %v450_v21, %v437_v15 }
  0xe6   : > { %v547_v12 = vpop.permute.xlu0 %546 }
  0xe7   : > { %v439_v41 = vpop.permute.xlu1 %438  ;;  %v468_v24 = vadd.f32 %v465_v18, %v454_v45 }
  0xe8   : > { %v444_v43 = vsel %vm395_vm4, %v439_v41, 0.0 }
  0xe9   : > { %v474_v46 = vmul.f32 %v472_v29, %v444_v43 }
  0xea   : > { %v516_v13 = vpop.permute.xlu0 %515 }
  0xeb   : > { %v477_v49 = vadd.f32 %v474_v46, %v466_v44  ;;  %v443_v56 = vpop.permute.xlu1 %442  ;;  %v520_v20 = vsel %vm395_vm4, %v516_v13, 0.0 }
  0xec   : > { %v446_v19 = vsel %vm395_vm4, %v443_v56, 0.0  ;;  %v550_v61 = vmul.f32 %v547_v12, %v520_v20 }
  0xed   : > { %v530_v52 = vadd.f32 %v527_v48, %v477_v49  ;;  %v476_v53 = vmul.f32 %v472_v29, %v446_v19 }
  0xee   : > { %v553_v54 = vadd.f32 %v550_v61, %v542_v51 }
  0xef   : > { %v479_v16 = vadd.f32 %v476_v53, %v468_v24  ;;  %v514_v23 = vpop.permute.xlu1 %513  ;;  %v541_v62 = vadd.f32 %v538_v30, %v530_v52 }
  0xf0   : > { %v519_v58 = vsel %vm395_vm4, %v514_v23, 0.0  ;;  %v862_v59 = vmul.f32 -1.442695, %v553_v54 }
  0xf1   : > { %v532_v60 = vadd.f32 %v529_v57, %v479_v16  ;;  %v549_v63 = vmul.f32 %v547_v12, %v519_v58 }
  0xf2   : > { %953 = vpow2.f32 %v862_v59 }
  0xf3   : > { %v552_v2 = vadd.f32 %v549_v63, %v541_v62  ;;  %v518_v3 = vpop.permute.xlu1 %517  ;;  %v543_v29 = vadd.f32 %v540_v0, %v532_v60 }
  0xf4   : > { %v521_v21 = vsel %vm395_vm4, %v518_v3, 0.0 }
  0xf5   : > { %v861_v22 = vmul.f32 -1.442695, %v552_v2  ;;  %v551_v25 = vmul.f32 %v547_v12, %v521_v21 }
  0xf7   : > { %955 = vpow2.f32 %v861_v22  ;;  %v554_v26 = vadd.f32 %v551_v25, %v543_v29 }
  0xf9   : > { %v863_v31 = vmul.f32 -1.442695, %v554_v26 }
  0xfb   : > { %957 = vpow2.f32 %v863_v31 }
  0xff   : > { %v954_v8 = vpop.eup %953 }
 0x100   : > { %v565_v5 = vadd.f32 1.0, %v954_v8 }
 0x102   : > { %959 = vrcp.f32 %v565_v5 }
 0x104   : > { %v956_v32 = vpop.eup %955 }
 0x105   : > { %v564_v33 = vadd.f32 1.0, %v956_v32 }
 0x107   : > { %961 = vrcp.f32 %v564_v33 }
 0x108   : > { %v958_v27 = vpop.eup %957 }
 0x109   : > { %v566_v28 = vadd.f32 1.0, %v958_v27 }
 0x10b   : > { %963 = vrcp.f32 %v566_v28 }
 0x10f   : > { %v960_v38 = vpop.eup %959 }
 0x110   : > { %v606_v6 = vrot.slane %v960_v38, %v581_v37 }
 0x112   : > { %v607_v11 = vcombine.high %v606_v6, %v606_v6  ;;  %v614_v39 = vrot.slane %v606_v6, %v581_v37 }
 0x114   : > { %v962_v40 = vpop.eup %961  ;;  %v621_v50 = vrot.slane %v607_v11, %v581_v37  ;;  %v622_v1 = vcombine.high %v614_v39, %v614_v39  ;;  %v667_v55 = vrot.slane %v614_v39, %v650_v7 }
 0x115   : > { %v582_v15 = vrot.slane %v962_v40, %v581_v37 }
 0x116   : > { %v623_v12 = vcombine.high %v621_v50, %v621_v50  ;;  %v671_v17 = vrot.slane %v621_v50, %v650_v7  ;;  %v675_v41 = vrot.slane %v622_v1, %v650_v7  ;;  %712 = vst [vmem:[%s1409_s7 + $0x20] sm:$0xff] %v667_v55 }
 0x117   : > { %v583_v4 = vcombine.high %v582_v15, %v582_v15  ;;  %v590_v42 = vrot.slane %v582_v15, %v581_v37 }
 0x118   : > { %v964_v43 = vpop.eup %963  ;;  %v679_v10 = vrot.slane %v623_v12, %v650_v7  ;;  %713 = vst [vmem:[%s1409_s7 + $0x28] sm:$0xff] %v671_v17  ;;  %714 = vst [vmem:[%s1409_s7 + $0x30] sm:$0xff] %v675_v41 }
 0x119   : > { %v597_v44 = vrot.slane %v583_v4, %v581_v37  ;;  %v598_v45 = vcombine.high %v590_v42, %v590_v42  ;;  %v651_v46 = vrot.slane %v590_v42, %v650_v7  ;;  %v630_v47 = vrot.slane %v964_v43, %v581_v37 }
 0x11a   : > { %715 = vst [vmem:[%s1409_s7 + $0x38] sm:$0xff] %v679_v10 }
 0x11b   : > { %v599_v13 = vcombine.high %v597_v44, %v597_v44  ;;  %v655_v18 = vrot.slane %v597_v44, %v650_v7  ;;  %v659_v48 = vrot.slane %v598_v45, %v650_v7  ;;  %708 = vst [vmem:[%s1409_s7] sm:$0xff] %v651_v46  ;;  %v631_v49 = vcombine.high %v630_v47, %v630_v47 }
 0x11c   : > { %v638_v56 = vrot.slane %v630_v47, %v581_v37 }
 0x11d   : > { %v663_v20 = vrot.slane %v599_v13, %v650_v7  ;;  %709 = vst [vmem:[%s1409_s7 + $0x8] sm:$0xff] %v655_v18  ;;  %710 = vst [vmem:[%s1409_s7 + $0x10] sm:$0xff] %v659_v48  ;;  %v645_v14 = vrot.slane %v631_v49, %v581_v37 }
 0x11e   : > { %v646_v19 = vcombine.high %v638_v56, %v638_v56  ;;  %v683_v51 = vrot.slane %v638_v56, %v650_v7 }
 0x11f   : > { %711 = vst [vmem:[%s1409_s7 + $0x18] sm:$0xff] %v663_v20  ;;  %v647_v61 = vcombine.high %v645_v14, %v645_v14  ;;  %v687_v24 = vrot.slane %v645_v14, %v650_v7  ;;  %727 = sbr.rel (!%p1145_p9) target bundleno = 319 (0x13f), region = 36 }
 0x120   : > { %v691_v52 = vrot.slane %v646_v19, %v650_v7  ;;  %716 = vst [vmem:[%s1409_s7 + $0x40] sm:$0xff] %v683_v51 }
 0x121   : > { %v695_v53 = vrot.slane %v647_v61, %v650_v7  ;;  %717 = vst [vmem:[%s1409_s7 + $0x48] sm:$0xff] %v687_v24 }
 0x122   : > { %718 = vst [vmem:[%s1409_s7 + $0x50] sm:$0xff] %v691_v52 }
 0x123   : > { %719 = vst [vmem:[%s1409_s7 + $0x58] sm:$0xff] %v695_v53 }
 0x124   : > { %s1508_s28 = smov (!%p731_p8, %s730_s28), 3 }
 0x125   : > { %s1427_s30 = sshll.u32 %s1508_s28, 9 }
 0x126   : > { %s736_s5 = ssub.s32 1536, %s1427_s30 }
 0x127   : > { %737 = vsyncadd %s721_s6, %s736_s5  ;;  %p866_p12 = scmp.ne.s32.totalorder %s1427_s30, 0  ;;  %s885_s21 = smul.u32 1536, %s1063_s12 }
 0x128   : > { %s745_s8 = sshll.u32 %s1409_s7, 4  ;;  %s1080_s24 = smov [#allocation5]   ;;  %s1440_s8 = int_to_ptr.vmem [resolvable:$true] %s745_s8 }
 0x129   : > { %s1438_s18 = scalar_lea.hbm %s1492_s2, %s885_s21  ;;  %s991_s19 = scalar_lea.vmem %s1440_s8, %s1427_s30 }
 0x12a   : > { %p992_p9 = scmp.ne.s32.totalorder %s1440_s8, %s991_s19  ;;  %s995_s25 = sshll.u32 %s1080_s24, 4  ;;  %s996_s25 = int_to_ptr.vmem [resolvable:$false] %s995_s25 }
 0x12b   : > { %s997_s12 = scalar_lea.vmem %s996_s25, 3072  ;;  %p998_p7 = scmp.lt.s32.totalorder %s1440_s8, %s996_s25 }
 0x12c   : > { %p993_p0 = pnand %p992_p9, %p866_p12  ;;  %p999_p10 = scmp.lt.s32.totalorder %s997_s12, %s991_s19 }
 0x12e   : > { %p994_p6 = pneg %p993_p0  ;;  %p1000_p13 = por %p999_p10, %p998_p7 }
 0x130   : > { %p1001_p1 = pnand %p1000_p13, %p994_p6 }
 0x132   : > { %1004 = shalt.err (!%p1001_p1)
}
 0x133   : > { %s1005_s26 = scalar_lea.hbm %s1438_s18, %s1427_s30  ;;  %s1009_s3 = scalar_lea.hbm %s1492_s2, 2560 }
 0x134   : > { %p1006_p2 = scmp.ne.s32.totalorder %s1438_s18, %s1005_s26  ;;  %p1010_p5 = scmp.lt.s32.totalorder %s1438_s18, %s1492_s2 }
 0x135   : > { %p1011_p8 = scmp.lt.s32.totalorder %s1009_s3, %s1005_s26 }
 0x136   : > { %p1007_p3 = pnand %p1006_p2, %p866_p12 }
 0x137   : > { %p1012_p9 = por %p1011_p8, %p1010_p5 }
 0x138   : > { %p1008_p4 = pneg %p1007_p3 }
 0x13a   : > { %p1013_p0 = pnand %p1012_p9, %p1008_p4 }
 0x13c   : > { %1016 = shalt.err (!%p1013_p0)
}
 0x13d   : > { %s1081_s28 = smov 128   ;;  %s1082_s5 = smov 8  }
 0x13e   : > { %751 = dma.vmem_to_hbm [thread:$0]  (%p866_p12), %s1440_s8, %s1427_s30, %s1438_s18, %s721_s6, %s1081_s28, %s1081_s28, %s1082_s5  }
 0x13f PF: > { %s760_s21 = sand.u32 1, %s1051_s9   ;;  %p1497_p6 = scmp.ge.s32.totalorder %s1071_s14, 2 }
 0x140   : > { %s761_s20 = scalar_lea.sflag [#allocation4], %s760_s21 }
 0x141   : > { %p891_p7 = pnand %p1497_p6, %p1152_p11 }
 0x143   : > { %p892_p10 = pneg %p891_p7 }
 0x145   : > { %1046 = dma.done.wait (%p892_p10), %s761_s20, 1536  }
 0x146   : > { %1048 = vsyncadd (%p892_p10), %s761_s20, 4294965760  ;;  %s18_s14 = sadd.s32 1, %s1071_s14   ;;  %s1498_s9 = smov %s1055_s10 }
 0x147   : > { %p15_p13 = scmp.ge.s32.totalorder %s18_s14, 4   ;;  %s1499_s10 = smov %s1059_s11 }
 0x148   : > { %s1500_s11 = smov %s1150_s22  ;;  %s1501_s12 = smov %s1067_s13 }
 0x149   : > { %s1502_s13 = smov %s1504_s17  ;;  %17 = sbr.rel (!%p15_p13) target bundleno = 6 (0x6), region = 76 }
 0x14e   :  { %766 = vsyncpa [#allocation3], 1 }
 0x14f   :  { %768 = vsyncpa [#allocation3 + $0x1], 1 }
 0x150   :  { %769 = vsyncpa [#allocation4], 1 }
 0x151   :  { %771 = vsyncpa [#allocation4 + $0x1], 1 }

</bundles_post_ra>
